<compile_context>
chip_gen: v7x
topology: tpu7x:2x2x1
jax: 0.10.0
libtpu: 0.0.40
codegen_flags: <defaults>
</compile_context>

<pallas_src>
import math

import jax
import jax.numpy as jnp
from jax.experimental import pallas as pl
from jax.experimental.pallas import tpu as pltpu


def _make_net_sr_kernel(n_hidden, matmul_dtype):
    """Kernel for a Net_SR with `n_hidden` hidden Linear+Tanh layers."""

    def kernel(*refs):
        # --- unpack refs: x, (W_i, b_i)*n_hidden, W_out, b_out, bond_ret, outs
        idx = 0
        x_ref = refs[idx]; idx += 1
        hidden_wb = []
        for _ in range(n_hidden):
            hidden_wb.append((refs[idx], refs[idx + 1]))
            idx += 2
        wout_ref = refs[idx]; bout_ref = refs[idx + 1]; ret_ref = refs[idx + 2]
        idx += 3
        f_ref, w_ref, xn_ref, mid_ref = refs[idx:idx + 4]

        # --- hidden MLP: tanh(Linear(...)) stack as 2-D MXU matmuls ----------
        h = x_ref[...]                                       # [T, N*F] (matmul dtype)
        act = None
        for (w_r, b_r) in hidden_wb:
            z = jnp.dot(h, w_r[...], preferred_element_type=jnp.float32)
            act = jnp.tanh(z + b_r[...])                     # elementwise stays f32
            h = act.astype(matmul_dtype)
        mid_ref[...] = act                                   # [T, N*H_last], lane-dense

        # --- output Linear -> per-firm scalar, directly (T, N) on the MXU ----
        out = jnp.dot(h, wout_ref[...], preferred_element_type=jnp.float32)
        out = out + bout_ref[...]                            # [T, N]

        # --- BatchNorm1d(n_firm, affine=False), training-mode batch stats ----
        mu = jnp.mean(out, axis=0, keepdims=True)
        var = jnp.mean(jnp.square(out - mu), axis=0, keepdims=True)  # biased var
        xn = (out - mu) * jax.lax.rsqrt(var + 1e-5)
        xn_ref[...] = xn

        # --- portfolio weights: softmax(-50 e^{-8x}) - softmax(-50 e^{8x}) ---
        e = jnp.exp(-8.0 * xn)                               # single EUP exp
        a = -50.0 * e
        # exp(+8x) via reciprocal (approx=True -> EUP vrcp, if precision allows)
        b = -50.0 * pl.reciprocal(e, approx=False)

        def softmax_firm(z):                                 # softmax over firms (lanes)
            z = z - jnp.max(z, axis=1, keepdims=True)
            ez = jnp.exp(z)
            return ez / jnp.sum(ez, axis=1, keepdims=True)

        w_ = softmax_firm(a) - softmax_firm(b)               # [T, N]
        w_ref[...] = w_

        # --- portfolio return f_ (before sign flip) ---------------------------
        f_ref[...] = jnp.sum(w_ * ret_ref[...], axis=1, keepdims=True)  # [T, 1]

    return kernel


def _block_diag(W, n):
    """Expand a per-firm weight W [f, h] into an n-block-diagonal [n*f, n*h]."""
    f, h = W.shape
    eye = jnp.eye(n, dtype=W.dtype)
    return jnp.einsum("ij,fh->ifjh", eye, W).reshape(n * f, n * h)


def net_sr_forward(x, params, bond_ret, g_bench, *, matmul_dtype=jnp.float32):
    """Pallas implementation of Net_SR.forward (in-sample path)."""
    T, N, F = x.shape
    hidden = params["hidden"]                    # list of (W [in,out], b [1,out])
    w_out, b_out = params["output"]              # [H_last, 1], [1, 1]
    h_last = hidden[-1][0].shape[1]
    n_hidden = len(hidden)

    # Lane-dense operands: firms folded into the feature (lane) axis; per-firm
    # Linear weights expanded to block-diagonal so each layer is one 2-D matmul.
    x_flat = x.reshape(T, N * F).astype(matmul_dtype)
    inputs = [x_flat]
    for (W, b) in hidden:
        inputs += [_block_diag(W, N).astype(matmul_dtype),
                   jnp.tile(b.astype(jnp.float32), (1, N))]
    inputs += [_block_diag(w_out, N).astype(matmul_dtype),        # [N*H_last, N]
               b_out.astype(jnp.float32),
               bond_ret.astype(jnp.float32)]

    out_shapes = (
        jax.ShapeDtypeStruct((T, 1), jnp.float32),            # raw f_
        jax.ShapeDtypeStruct((T, N), jnp.float32),            # w_
        jax.ShapeDtypeStruct((T, N), jnp.float32),            # batchnormed x
        jax.ShapeDtypeStruct((T, N * h_last), jnp.float32),   # mid_x (lane-dense)
    )

    # Size the scoped VMEM limit to the actual buffers (v7x physical = 64 MiB).
    io_bytes = sum(math.prod(a.shape) * a.dtype.itemsize for a in inputs)
    io_bytes += sum(math.prod(s.shape) * jnp.dtype(s.dtype).itemsize
                    for s in out_shapes)
    vmem_limit = int(min(max(2 * io_bytes + (4 << 20), 32 << 20), 64 << 20))

    vmem = pl.BlockSpec(memory_space=pltpu.MemorySpace.VMEM)
    f_raw, w_, xn, mid_flat = pl.pallas_call(
        _make_net_sr_kernel(n_hidden, matmul_dtype),
        out_shape=out_shapes,
        in_specs=[vmem] * len(inputs),
        out_specs=(vmem, vmem, vmem, vmem),
        compiler_params=pltpu.CompilerParams(vmem_limit_bytes=vmem_limit),
    )(*inputs)
    mid_x = mid_flat.reshape(T, N, h_last)

    # --- tiny Sharpe-ratio loss (glue in plain JAX) ----------------------------
    sign = jnp.sign(jnp.mean(f_raw))
    f_ = f_raw * sign
    F_ = jnp.concatenate([g_bench, f_], axis=1)               # [T, n_bench + 1]
    m = jnp.mean(F_, axis=0)
    Fc = F_ - m
    C = (Fc.T @ Fc) / (F_.shape[0] - 1)                        # torch .cov() (correction=1)
    loss = jnp.exp(-(m @ jnp.linalg.inv(C) @ m))
    return loss, f_, w_, xn, mid_x


def _ref_forward(x, params, bond_ret, g_bench):
    """Pure-JAX reference of the same math (for a correctness check)."""
    h = x
    for (W, b) in params["hidden"]:
        h = jnp.tanh(h @ W + b)
    mid = h
    Wout, bout = params["output"]
    out = (h @ Wout)[..., 0] + bout[0, 0]
    mu = out.mean(axis=0, keepdims=True)
    var = ((out - mu) ** 2).mean(axis=0, keepdims=True)
    xn = (out - mu) / jnp.sqrt(var + 1e-5)
    a = -50.0 * jnp.exp(-8.0 * xn)
    b2 = -50.0 * jnp.exp(8.0 * xn)
    w_ = jax.nn.softmax(a, axis=1) - jax.nn.softmax(b2, axis=1)
    f_raw = (w_ * bond_ret).sum(axis=1, keepdims=True)
    sign = jnp.sign(f_raw.mean())
    f_ = f_raw * sign
    F_ = jnp.concatenate([g_bench, f_], axis=1)
    m = F_.mean(axis=0)
    Fc = F_ - m
    C = Fc.T @ Fc / (F_.shape[0] - 1)
    loss = jnp.exp(-(m @ jnp.linalg.inv(C) @ m))
    return loss, f_, w_, xn, mid


def init_params(key, n_feature, layers):
    """Deterministic PyTorch-Linear-style init (uniform +-1/sqrt(fan_in))."""
    params = {"hidden": [], "output": None}
    dims = [n_feature] + list(layers)
    for i in range(len(layers)):
        key, k1, k2 = jax.random.split(key, 3)
        bound = 1.0 / (dims[i] ** 0.5)
        W = jax.random.uniform(k1, (dims[i], dims[i + 1]), jnp.float32, -bound, bound)
        b = jax.random.uniform(k2, (1, dims[i + 1]), jnp.float32, -bound, bound)
        params["hidden"].append((W, b))
    key, k1, k2 = jax.random.split(key, 3)
    bound = 1.0 / (dims[-1] ** 0.5)
    Wout = jax.random.uniform(k1, (dims[-1], 1), jnp.float32, -bound, bound)
    bout = jax.random.uniform(k2, (1, 1), jnp.float32, -bound, bound)
    params["output"] = (Wout, bout)
    return params


if __name__ == "__main__":
    # Small shapes consistent with the module: T periods, n_firm firms, features.
    T, n_firm, n_feature = 8, 16, 8
    layers = (32, 16)
    n_bench = 3

    key = jax.random.PRNGKey(0)
    k_x, k_ret, k_bench, k_param = jax.random.split(key, 4)
    x = jax.random.normal(k_x, (T, n_firm, n_feature), jnp.float32)
    bond_ret = 0.01 * jax.random.normal(k_ret, (T, n_firm), jnp.float32)
    g_bench = 0.01 * jax.random.normal(k_bench, (T, n_bench), jnp.float32)
    params = init_params(k_param, n_feature, layers)

    outs = net_sr_forward(x, params, bond_ret, g_bench)
    outs = jax.block_until_ready(outs)
    loss, f_, w_, xn, mid_x = outs

    # Correctness check vs. a pure-JAX reference.  The -50*exp(+-8*x_hat) double
    # softmax amplifies ulp-level matmul-order differences, so compare at 1e-3
    # (loss / xn / mid_x typically agree to ~1e-6).
    ref = _ref_forward(x, params, bond_ret, g_bench)
    for name, got, want in zip(("loss", "f_", "w_", "xn", "mid_x"), outs, ref):
        assert jnp.allclose(got, want, atol=1e-3, rtol=1e-3), (name, got, want)

    print("KERNEL_OK")
</pallas_src>

<mosaic_0001>
module attributes {stable_mosaic.version = 11 : i64} {
  func.func @kernel(%arg0: memref<8x128xf32, #tpu.memory_space<vmem>>, %arg1: memref<128x512xf32, #tpu.memory_space<vmem>>, %arg2: memref<1x512xf32, #tpu.memory_space<vmem>>, %arg3: memref<512x256xf32, #tpu.memory_space<vmem>>, %arg4: memref<1x256xf32, #tpu.memory_space<vmem>>, %arg5: memref<256x16xf32, #tpu.memory_space<vmem>>, %arg6: memref<1x1xf32, #tpu.memory_space<vmem>>, %arg7: memref<8x16xf32, #tpu.memory_space<vmem>>, %arg8: memref<8x1xf32, #tpu.memory_space<vmem>>, %arg9: memref<8x16xf32, #tpu.memory_space<vmem>>, %arg10: memref<8x16xf32, #tpu.memory_space<vmem>>, %arg11: memref<8x256xf32, #tpu.memory_space<vmem>>) attributes {dimension_semantics = [], scalar_prefetch = 0 : i64, scratch_operands = 0 : i64, tpu.core_type = #tpu.core_type<tc>} {
    %c0 = arith.constant 0 : index
    %c0_0 = arith.constant 0 : index
    %0 = vector.load %arg0[%c0, %c0_0] : memref<8x128xf32, #tpu.memory_space<vmem>>, vector<8x128xf32>
    %c0_1 = arith.constant 0 : index
    %c0_2 = arith.constant 0 : index
    %1 = vector.load %arg1[%c0_1, %c0_2] : memref<128x512xf32, #tpu.memory_space<vmem>>, vector<128x512xf32>
    %cst = arith.constant dense<0.000000e+00> : vector<8x512xf32>
    %2 = tpu.matmul %0, %1, %cst {dimension_numbers = #tpu.dot_dimension_numbers<[1], [0], [0], [1], [0, 0, 1, 1], [], []>} : vector<8x128xf32>, vector<128x512xf32>, vector<8x512xf32> -> vector<8x512xf32>
    %c0_3 = arith.constant 0 : index
    %c0_4 = arith.constant 0 : index
    %3 = vector.load %arg2[%c0_3, %c0_4] : memref<1x512xf32, #tpu.memory_space<vmem>>, vector<1x512xf32>
    %4 = vector.broadcast %3 : vector<1x512xf32> to vector<8x512xf32>
    %5 = arith.addf %2, %4 : vector<8x512xf32>
    %6 = math.tanh %5 : vector<8x512xf32>
    %c0_5 = arith.constant 0 : index
    %c0_6 = arith.constant 0 : index
    %7 = vector.load %arg3[%c0_5, %c0_6] : memref<512x256xf32, #tpu.memory_space<vmem>>, vector<512x256xf32>
    %cst_7 = arith.constant dense<0.000000e+00> : vector<8x256xf32>
    %8 = tpu.matmul %6, %7, %cst_7 {dimension_numbers = #tpu.dot_dimension_numbers<[1], [0], [0], [1], [0, 0, 1, 1], [], []>} : vector<8x512xf32>, vector<512x256xf32>, vector<8x256xf32> -> vector<8x256xf32>
    %c0_8 = arith.constant 0 : index
    %c0_9 = arith.constant 0 : index
    %9 = vector.load %arg4[%c0_8, %c0_9] : memref<1x256xf32, #tpu.memory_space<vmem>>, vector<1x256xf32>
    %10 = vector.broadcast %9 : vector<1x256xf32> to vector<8x256xf32>
    %11 = arith.addf %8, %10 : vector<8x256xf32>
    %12 = math.tanh %11 : vector<8x256xf32>
    %c0_10 = arith.constant 0 : index
    %c0_11 = arith.constant 0 : index
    %13 = vector.load %arg11[%c0_10, %c0_11] : memref<8x256xf32, #tpu.memory_space<vmem>>, vector<8x256xf32>
    tpu.vector_store %arg11[%c0_10, %c0_11], %12 {strides = array<i32>} : memref<8x256xf32, #tpu.memory_space<vmem>>, vector<8x256xf32>,
    %c0_12 = arith.constant 0 : index
    %c0_13 = arith.constant 0 : index
    %14 = vector.load %arg5[%c0_12, %c0_13] : memref<256x16xf32, #tpu.memory_space<vmem>>, vector<256x16xf32>
    %cst_14 = arith.constant dense<0.000000e+00> : vector<8x16xf32>
    %15 = tpu.matmul %12, %14, %cst_14 {dimension_numbers = #tpu.dot_dimension_numbers<[1], [0], [0], [1], [0, 0, 1, 1], [], []>} : vector<8x256xf32>, vector<256x16xf32>, vector<8x16xf32> -> vector<8x16xf32>
    %c0_15 = arith.constant 0 : index
    %c0_16 = arith.constant 0 : index
    %16 = vector.load %arg6[%c0_15, %c0_16] : memref<1x1xf32, #tpu.memory_space<vmem>>, vector<1x1xf32>
    %17 = vector.broadcast %16 : vector<1x1xf32> to vector<8x16xf32>
    %18 = arith.addf %15, %17 : vector<8x16xf32>
    %cst_17 = arith.constant dense<0.000000e+00> : vector<16xf32>
    %19 = vector.multi_reduction <add>, %18, %cst_17 [0] : vector<8x16xf32> to vector<16xf32>
    %20 = vector.shape_cast %19 : vector<16xf32> to vector<1x16xf32>
    %cst_18 = arith.constant 8.000000e+00 : f32
    %21 = vector.broadcast %cst_18 : f32 to vector<1x16xf32>
    %22 = arith.divf %20, %21 : vector<1x16xf32>
    %23 = vector.broadcast %22 : vector<1x16xf32> to vector<8x16xf32>
    %24 = arith.subf %18, %23 : vector<8x16xf32>
    %25 = arith.mulf %24, %24 : vector<8x16xf32>
    %cst_19 = arith.constant dense<0.000000e+00> : vector<16xf32>
    %26 = vector.multi_reduction <add>, %25, %cst_19 [0] : vector<8x16xf32> to vector<16xf32>
    %27 = vector.shape_cast %26 : vector<16xf32> to vector<1x16xf32>
    %cst_20 = arith.constant 8.000000e+00 : f32
    %28 = vector.broadcast %cst_20 : f32 to vector<1x16xf32>
    %29 = arith.divf %27, %28 : vector<1x16xf32>
    %30 = vector.broadcast %22 : vector<1x16xf32> to vector<8x16xf32>
    %31 = arith.subf %18, %30 : vector<8x16xf32>
    %cst_21 = arith.constant 9.99999974E-6 : f32
    %32 = vector.broadcast %cst_21 : f32 to vector<1x16xf32>
    %33 = arith.addf %29, %32 : vector<1x16xf32>
    %34 = math.rsqrt %33 : vector<1x16xf32>
    %35 = vector.broadcast %34 : vector<1x16xf32> to vector<8x16xf32>
    %36 = arith.mulf %31, %35 : vector<8x16xf32>
    %c0_22 = arith.constant 0 : index
    %c0_23 = arith.constant 0 : index
    %37 = vector.load %arg10[%c0_22, %c0_23] : memref<8x16xf32, #tpu.memory_space<vmem>>, vector<8x16xf32>
    tpu.vector_store %arg10[%c0_22, %c0_23], %36 {strides = array<i32>} : memref<8x16xf32, #tpu.memory_space<vmem>>, vector<8x16xf32>,
    %cst_24 = arith.constant -8.000000e+00 : f32
    %38 = vector.broadcast %cst_24 : f32 to vector<8x16xf32>
    %39 = arith.mulf %38, %36 : vector<8x16xf32>
    %40 = math.exp %39 : vector<8x16xf32>
    %cst_25 = arith.constant -5.000000e+01 : f32
    %41 = vector.broadcast %cst_25 : f32 to vector<8x16xf32>
    %42 = arith.mulf %41, %40 : vector<8x16xf32>
    %43 = tpu.reciprocal %40 : vector<8x16xf32> -> vector<8x16xf32>
    %cst_26 = arith.constant -5.000000e+01 : f32
    %44 = vector.broadcast %cst_26 : f32 to vector<8x16xf32>
    %45 = arith.mulf %44, %43 : vector<8x16xf32>
    %cst_27 = arith.constant dense<0xFF800000> : vector<8xf32>
    %46 = vector.multi_reduction <maximumf>, %42, %cst_27 [1] : vector<8x16xf32> to vector<8xf32>
    %47 = vector.shape_cast %46 : vector<8xf32> to vector<8x1xf32>
    %48 = vector.broadcast %47 : vector<8x1xf32> to vector<8x16xf32>
    %49 = arith.subf %42, %48 : vector<8x16xf32>
    %50 = math.exp %49 : vector<8x16xf32>
    %cst_28 = arith.constant dense<0.000000e+00> : vector<8xf32>
    %51 = vector.multi_reduction <add>, %50, %cst_28 [1] : vector<8x16xf32> to vector<8xf32>
    %52 = vector.shape_cast %51 : vector<8xf32> to vector<8x1xf32>
    %53 = vector.broadcast %52 : vector<8x1xf32> to vector<8x16xf32>
    %54 = arith.divf %50, %53 : vector<8x16xf32>
    %cst_29 = arith.constant dense<0xFF800000> : vector<8xf32>
    %55 = vector.multi_reduction <maximumf>, %45, %cst_29 [1] : vector<8x16xf32> to vector<8xf32>
    %56 = vector.shape_cast %55 : vector<8xf32> to vector<8x1xf32>
    %57 = vector.broadcast %56 : vector<8x1xf32> to vector<8x16xf32>
    %58 = arith.subf %45, %57 : vector<8x16xf32>
    %59 = math.exp %58 : vector<8x16xf32>
    %cst_30 = arith.constant dense<0.000000e+00> : vector<8xf32>
    %60 = vector.multi_reduction <add>, %59, %cst_30 [1] : vector<8x16xf32> to vector<8xf32>
    %61 = vector.shape_cast %60 : vector<8xf32> to vector<8x1xf32>
    %62 = vector.broadcast %61 : vector<8x1xf32> to vector<8x16xf32>
    %63 = arith.divf %59, %62 : vector<8x16xf32>
    %64 = arith.subf %54, %63 : vector<8x16xf32>
    %c0_31 = arith.constant 0 : index
    %c0_32 = arith.constant 0 : index
    %65 = vector.load %arg9[%c0_31, %c0_32] : memref<8x16xf32, #tpu.memory_space<vmem>>, vector<8x16xf32>
    tpu.vector_store %arg9[%c0_31, %c0_32], %64 {strides = array<i32>} : memref<8x16xf32, #tpu.memory_space<vmem>>, vector<8x16xf32>,
    %c0_33 = arith.constant 0 : index
    %c0_34 = arith.constant 0 : index
    %66 = vector.load %arg7[%c0_33, %c0_34] : memref<8x16xf32, #tpu.memory_space<vmem>>, vector<8x16xf32>
    %67 = arith.mulf %64, %66 : vector<8x16xf32>
    %cst_35 = arith.constant dense<0.000000e+00> : vector<8xf32>
    %68 = vector.multi_reduction <add>, %67, %cst_35 [1] : vector<8x16xf32> to vector<8xf32>
    %69 = vector.shape_cast %68 : vector<8xf32> to vector<8x1xf32>
    %c0_36 = arith.constant 0 : index
    %c0_37 = arith.constant 0 : index
    %70 = vector.load %arg8[%c0_36, %c0_37] : memref<8x1xf32, #tpu.memory_space<vmem>>, vector<8x1xf32>
    tpu.vector_store %arg8[%c0_36, %c0_37], %69 {strides = array<i32>} : memref<8x1xf32, #tpu.memory_space<vmem>>, vector<8x1xf32>,
    return
  }
}

</mosaic_0001>

<bundles_post_ra>
// kernel: tpu_custom_call.1
= control target key start
LH: loop header
LB: loop body
LE: loop exit
PB: predicated region body
PF: predicated region fallthrough
CT: control target
= control target key end

     0   :  { %s1507_s0 = inlined_call_operand.vmem [shape: f32[8,128], index: 0, kind: input, shape index: {}]   ;;  %s1508_s1 = inlined_call_operand.hbm [shape: f32[128,512], index: 1, kind: input, shape index: {}]   ;;  %s1509_s2 = inlined_call_operand.vmem [shape: f32[1,512], index: 2, kind: input, shape index: {}]   ;;  %s1510_s3 = inlined_call_operand.hbm [shape: f32[512,256], index: 3, kind: input, shape index: {}]   ;;  %s1511_s4 = inlined_call_operand.vmem [shape: f32[1,256], index: 4, kind: input, shape index: {}]   ;;  %s1512_s5 = inlined_call_operand.vmem [shape: f32[256,16], index: 5, kind: input, shape index: {}]   ;;  %s1513_s6 = inlined_call_operand.<no memory space> [shape: f32[1,1], index: 6, kind: input, shape index: {}]   ;;  %s1514_s7 = inlined_call_operand.vmem [shape: f32[8,16], index: 7, kind: input, shape index: {}]   ;;  %s1515_s8 = inlined_call_operand.vmem [shape: f32[8,1], index: 8, kind: output, shape index: {0}]   ;;  %s1516_s9 = inlined_call_operand.hbm [shape: f32[8,16], index: 9, kind: output, shape index: {1}]   ;;  %s1517_s10 = inlined_call_operand.hbm [shape: f32[8,16], index: 10, kind: output, shape index: {2}]   ;;  %s1518_s11 = inlined_call_operand.hbm [shape: f32[8,256], index: 11, kind: output, shape index: {3}]  }
   0x1   :  { %v17_v0 = vstv %s1513_s6 }
   0x2   :  { %18 = vst [vmem:[#allocation2] sm:$0x1] %v17_v0 }
   0x3   :  { %19 = vsyncpa [#allocation4], 0 }
   0x4   :  { %20 = vsyncpa [#allocation7], 0 }
   0x5   :  { %21 = vsyncpa [#allocation5], 0 }
   0x6   :  { %22 = vsyncpa [#allocation10], 0  ;;  %s1224_s19 = smov [#allocation3]   ;;  %s1106_s23 = scalar_lea.hbm %s1508_s1, 8192 }
   0x7   :  { %s30_s20 = sshll.u32 %s1224_s19, 4  ;;  %p1107_p0 = scmp.ne.s32.totalorder %s1508_s1, %s1106_s23  ;;  %s31_s20 = int_to_ptr.vmem [resolvable:$true] %s30_s20 }
   0x8   :  { %p1110_p1 = scmp.lt.u32.totalorder %s1106_s23, %s1508_s1 }
   0xa   :  { %p1112_p2 = pnand %p1110_p1, %p1107_p0 }
   0xc   :  { %1115 = shalt.err (!%p1112_p2)
}
   0xd   :  { %s1116_s6 = scalar_lea.vmem %s31_s20, 8192  ;;  %p1121_p4 = scmp.lt.s32.totalorder %s31_s20, %s31_s20 }
   0xe   :  { %p1117_p3 = scmp.ne.s32.totalorder %s31_s20, %s1116_s6  ;;  %p1122_p5 = scmp.lt.s32.totalorder %s1116_s6, %s1116_s6 }
  0x10   :  { %p1123_p6 = por %p1122_p5, %p1121_p4 }
  0x12   :  { %p1124_p7 = pnand %p1123_p6, %p1117_p3 }
  0x14   :  { %1127 = shalt.err (!%p1124_p7)
}
  0x15   :  { %s1225_s28 = smov 512   ;;  %s1226_s29 = smov 32  }
  0x16   :  { %36 = dma.hbm_to_vmem [thread:$0]  %s1508_s1, 8192, %s31_s20, [#allocation4], %s1225_s28, %s1225_s28, %s1226_s29  }
  0x17   :  { %s1227_s13 = smov [#allocation6]   ;;  %s1128_s17 = scalar_lea.hbm %s1510_s3, 16384 }
  0x18   :  { %s44_s14 = sshll.u32 %s1227_s13, 4  ;;  %p1129_p8 = scmp.ne.s32.totalorder %s1510_s3, %s1128_s17  ;;  %s45_s14 = int_to_ptr.vmem [resolvable:$true] %s44_s14 }
  0x19   :  { %p1132_p9 = scmp.lt.u32.totalorder %s1128_s17, %s1510_s3 }
  0x1b   :  { %p1134_p10 = pnand %p1132_p9, %p1129_p8 }
  0x1d   :  { %1137 = shalt.err (!%p1134_p10)
}
  0x1e   :  { %s1138_s23 = scalar_lea.vmem %s45_s14, 16384  ;;  %p1143_p12 = scmp.lt.s32.totalorder %s45_s14, %s45_s14 }
  0x1f   :  { %p1139_p11 = scmp.ne.s32.totalorder %s45_s14, %s1138_s23  ;;  %p1144_p13 = scmp.lt.s32.totalorder %s1138_s23, %s1138_s23 }
  0x21   :  { %p1145_p0 = por %p1144_p13, %p1143_p12 }
  0x23   :  { %p1146_p1 = pnand %p1145_p0, %p1139_p11 }
  0x25   :  { %1149 = shalt.err (!%p1146_p1)
}
  0x26   :  { %s1228_s1 = smov 256   ;;  %s1229_s20 = smov 16  }
  0x27   :  { %50 = dma.hbm_to_vmem [thread:$0]  %s1510_s3, 16384, %s45_s14, [#allocation7], %s1228_s1, %s1228_s1, %s1229_s20  }
  0x28   :  { %1216 = dma.done.wait [#allocation4], 8192  }
  0x29   :  { %1217 = vsyncadd [#allocation4], 4294959104 }
  0x2a   :  { %1218 = dma.done.wait [#allocation7], 16384  }
  0x2b   :  { %1219 = vsyncadd [#allocation7], 4294950912  ;;  %v1230_v1 = vmov 0.0   ;;  %v67_v2 = vld [vmem:[#allocation3 + $0x8] sm:$0xff]  ;;  %v66_v4 = vld [vmem:[#allocation3] sm:$0xff]  ;;  %vm696_vm0 = vcmask 130048  }
  0x2c   :  { %216 = vmatprep.mubr.f32.mxu1 %v1230_v1  ;;  %v71_v3 = vld [vmem:[#allocation3 + $0x28] sm:$0xff]  ;;  %v70_v6 = vld [vmem:[#allocation3 + $0x20] sm:$0xff]  ;;  %v301_v46 = vld [vmem:[#allocation6 + $0x18] sm:$0xff]  ;;  %s1232_s25 = smov [#allocation9]   ;;  %s1233_s26 = smov [#allocation8]  }
  0x2d   :  { %v840_v5 = vpack.c.bf16 %v71_v3, %v67_v2  ;;  %v75_v7 = vld [vmem:[#allocation3 + $0x48] sm:$0xff]  ;;  %v842_v9 = vpack.c.bf16 %v70_v6, %v66_v4  ;;  %v74_v11 = vld [vmem:[#allocation3 + $0x40] sm:$0xff]  ;;  %v300_v48 = vld [vmem:[#allocation6 + $0x10] sm:$0xff]  ;;  %s775_s3 = sshll.u32 %s1232_s25, 4  ;;  %s776_s3 = int_to_ptr.vmem [resolvable:$true] %s775_s3 }
  0x2e   :  { %v79_v8 = vld [vmem:[#allocation3 + $0x68] sm:$0xff]  ;;  %v78_v12 = vld [vmem:[#allocation3 + $0x60] sm:$0xff]  ;;  %v305_v52 = vld [vmem:[#allocation6 + $0x38] sm:$0xff]  ;;  %s1150_s27 = scalar_lea.vmem %s776_s3, 128  ;;  %p1155_p3 = scmp.lt.s32.totalorder %s776_s3, %s776_s3 }
  0x2f   :  { %v844_v10 = vpack.c.bf16 %v79_v8, %v75_v7  ;;  %v83_v13 = vld [vmem:[#allocation3 + $0x88] sm:$0xff]  ;;  %841 = vmatprep.subr.bf16.mxu1 %v840_v5  ;;  %v846_v15 = vpack.c.bf16 %v78_v12, %v74_v11  ;;  %v82_v17 = vld [vmem:[#allocation3 + $0x80] sm:$0xff]  ;;  %v304_v56 = vld [vmem:[#allocation6 + $0x30] sm:$0xff]  ;;  %p1151_p2 = scmp.ne.s32.totalorder %s776_s3, %s1150_s27  ;;  %p1156_p4 = scmp.lt.s32.totalorder %s1150_s27, %s1150_s27 }
  0x30   :  { %v87_v14 = vld [vmem:[#allocation3 + $0xa8] sm:$0xff]  ;;  %843 = vmatpush1.bf16.msra.mxu1 %v842_v9  ;;  %v86_v18 = vld [vmem:[#allocation3 + $0xa0] sm:$0xff]  ;;  %v309_v58 = vld [vmem:[#allocation6 + $0x58] sm:$0xff] }
  0x31   :  { %845 = vmatprep.subr.bf16.mxu1 %v844_v10  ;;  %v848_v16 = vpack.c.bf16 %v87_v14, %v83_v13  ;;  %v91_v19 = vld [vmem:[#allocation3 + $0xc8] sm:$0xff]  ;;  %v850_v21 = vpack.c.bf16 %v86_v18, %v82_v17  ;;  %v90_v23 = vld [vmem:[#allocation3 + $0xc0] sm:$0xff]  ;;  %v69_v62 = vld [vmem:[#allocation3 + $0x18] sm:$0xff]  ;;  %p1157_p5 = por %p1156_p4, %p1155_p3 }
  0x32   :  { %v95_v20 = vld [vmem:[#allocation3 + $0xe8] sm:$0xff]  ;;  %v94_v24 = vld [vmem:[#allocation3 + $0xe0] sm:$0xff]  ;;  %v73_v63 = vld [vmem:[#allocation3 + $0x38] sm:$0xff] }
  0x33   :  { %v852_v22 = vpack.c.bf16 %v95_v20, %v91_v19  ;;  %v99_v25 = vld [vmem:[#allocation3 + $0x108] sm:$0xff]  ;;  %v854_v27 = vpack.c.bf16 %v94_v24, %v90_v23  ;;  %v98_v29 = vld [vmem:[#allocation3 + $0x100] sm:$0xff]  ;;  %v308_v4 = vld [vmem:[#allocation6 + $0x50] sm:$0xff]  ;;  %v872_v8 = vpack.c.bf16 %v73_v63, %v69_v62  ;;  %p1158_p6 = pnand %p1157_p5, %p1151_p2 }
  0x34   :  { %847 = vmatpush1.bf16.msra.mxu1 %v846_v15  ;;  %v103_v26 = vld [vmem:[#allocation3 + $0x128] sm:$0xff]  ;;  %v102_v30 = vld [vmem:[#allocation3 + $0x120] sm:$0xff]  ;;  %v313_v7 = vld [vmem:[#allocation6 + $0x78] sm:$0xff] }
  0x35   :  { %849 = vmatprep.subr.bf16.mxu1 %v848_v16  ;;  %v856_v28 = vpack.c.bf16 %v103_v26, %v99_v25  ;;  %v107_v31 = vld [vmem:[#allocation3 + $0x148] sm:$0xff]  ;;  %v858_v33 = vpack.c.bf16 %v102_v30, %v98_v29  ;;  %v106_v35 = vld [vmem:[#allocation3 + $0x140] sm:$0xff]  ;;  %v68_v9 = vld [vmem:[#allocation3 + $0x10] sm:$0xff] }
  0x36   :  { %v111_v32 = vld [vmem:[#allocation3 + $0x168] sm:$0xff]  ;;  %v110_v36 = vld [vmem:[#allocation3 + $0x160] sm:$0xff]  ;;  %v72_v10 = vld [vmem:[#allocation3 + $0x30] sm:$0xff] }
  0x37   :  { %v860_v34 = vpack.c.bf16 %v111_v32, %v107_v31  ;;  %v115_v37 = vld [vmem:[#allocation3 + $0x188] sm:$0xff]  ;;  %v862_v39 = vpack.c.bf16 %v110_v36, %v106_v35  ;;  %v114_v40 = vld [vmem:[#allocation3 + $0x180] sm:$0xff]  ;;  %v77_v11 = vld [vmem:[#allocation3 + $0x58] sm:$0xff]  ;;  %v874_v18 = vpack.c.bf16 %v72_v10, %v68_v9 }
  0x38   :  { %851 = vmatpush1.bf16.msra.mxu1 %v850_v21  ;;  %v119_v38 = vld [vmem:[#allocation3 + $0x1a8] sm:$0xff]  ;;  %v118_v41 = vld [vmem:[#allocation3 + $0x1a0] sm:$0xff]  ;;  %v81_v12 = vld [vmem:[#allocation3 + $0x78] sm:$0xff] }
  0x39   :  { %853 = vmatprep.subr.bf16.mxu1 %v852_v22  ;;  %v864_v42 = vpack.c.bf16 %v119_v38, %v115_v37  ;;  %v123_v43 = vld [vmem:[#allocation3 + $0x1c8] sm:$0xff]  ;;  %v298_v47 = vld [vmem:[#allocation6] sm:$0xff]  ;;  %v866_v54 = vpack.c.bf16 %v118_v41, %v114_v40  ;;  %v312_v16 = vld [vmem:[#allocation6 + $0x70] sm:$0xff]  ;;  %v876_v21 = vpack.c.bf16 %v81_v12, %v77_v11 }
  0x3a   :  { %v127_v44 = vld [vmem:[#allocation3 + $0x1e8] sm:$0xff]  ;;  %v906_v50 = vpack.c.bf16 %v300_v48, %v298_v47  ;;  %v302_v53 = vld [vmem:[#allocation6 + $0x20] sm:$0xff]  ;;  %v317_v20 = vld [vmem:[#allocation6 + $0x98] sm:$0xff] }
  0x3b   :  { %v299_v45 = vld [vmem:[#allocation6 + $0x8] sm:$0xff]  ;;  %v868_v59 = vpack.c.bf16 %v127_v44, %v123_v43  ;;  %v122_v60 = vld [vmem:[#allocation3 + $0x1c0] sm:$0xff]  ;;  %v910_v0 = vpack.c.bf16 %v304_v56, %v302_v53  ;;  %v76_v22 = vld [vmem:[#allocation3 + $0x50] sm:$0xff] }
  0x3c   :  { %855 = vmatpush1.bf16.msra.mxu1 %v854_v27  ;;  %v904_v49 = vpack.c.bf16 %v301_v46, %v299_v45  ;;  %v303_v51 = vld [vmem:[#allocation6 + $0x28] sm:$0xff]  ;;  %v126_v61 = vld [vmem:[#allocation3 + $0x1e0] sm:$0xff]  ;;  %v80_v23 = vld [vmem:[#allocation3 + $0x70] sm:$0xff] }
  0x3d   :  { %857 = vmatprep.subr.bf16.mxu1 %v856_v28  ;;  %v908_v55 = vpack.c.bf16 %v305_v52, %v303_v51  ;;  %v307_v57 = vld [vmem:[#allocation6 + $0x48] sm:$0xff]  ;;  %v306_v3 = vld [vmem:[#allocation6 + $0x40] sm:$0xff]  ;;  %v870_v5 = vpack.c.bf16 %v126_v61, %v122_v60  ;;  %v85_v24 = vld [vmem:[#allocation3 + $0x98] sm:$0xff]  ;;  %v878_v30 = vpack.c.bf16 %v80_v23, %v76_v22 }
  0x3e   :  { %905 = vmatprep.subr.bf16.mxu0 %v904_v49  ;;  %v912_v2 = vpack.c.bf16 %v309_v58, %v307_v57  ;;  %v311_v6 = vld [vmem:[#allocation6 + $0x68] sm:$0xff]  ;;  %v914_v13 = vpack.c.bf16 %v308_v4, %v306_v3  ;;  %v310_v15 = vld [vmem:[#allocation6 + $0x60] sm:$0xff]  ;;  %v89_v25 = vld [vmem:[#allocation3 + $0xb8] sm:$0xff] }
  0x3f   :  { %907 = vmatpush1.bf16.msra.mxu0 %v906_v50  ;;  %v916_v14 = vpack.c.bf16 %v313_v7, %v311_v6  ;;  %v1326_v17 = vld [vmem:[%s1507_s0] sm:$0xff]  ;;  %v315_v19 = vld [vmem:[#allocation6 + $0x88] sm:$0xff]  ;;  %v918_v26 = vpack.c.bf16 %v312_v16, %v310_v15  ;;  %v316_v29 = vld [vmem:[#allocation6 + $0x90] sm:$0xff]  ;;  %s765_s0 = sshll.u32 %s1233_s26, 4  ;;  %s766_s0 = int_to_ptr.vmem [resolvable:$true] %s765_s0 }
  0x40   :  { %859 = vmatpush1.bf16.msra.mxu1 %v858_v33  ;;  %909 = vmatprep.subr.bf16.mxu0 %v908_v55  ;;  %v920_v27 = vpack.c.bf16 %v317_v20, %v315_v19  ;;  %v314_v28 = vld [vmem:[#allocation6 + $0x80] sm:$0xff]  ;;  %v319_v31 = vld [vmem:[#allocation6 + $0xa8] sm:$0xff]  ;;  %v321_v32 = vld [vmem:[#allocation6 + $0xb8] sm:$0xff]  ;;  %v880_v33 = vpack.c.bf16 %v89_v25, %v85_v24 }
  0x41   :  { %861 = vmatprep.subr.bf16.mxu1 %v860_v34  ;;  %v84_v34 = vld [vmem:[#allocation3 + $0x90] sm:$0xff]  ;;  %v93_v36 = vld [vmem:[#allocation3 + $0xd8] sm:$0xff]  ;;  %v922_v38 = vpack.c.bf16 %v316_v29, %v314_v28  ;;  %v318_v40 = vld [vmem:[#allocation6 + $0xa0] sm:$0xff] }
  0x42   :  { %v88_v35 = vld [vmem:[#allocation3 + $0xb0] sm:$0xff]  ;;  %v97_v37 = vld [vmem:[#allocation3 + $0xf8] sm:$0xff]  ;;  %v323_v43 = vld [vmem:[#allocation6 + $0xc8] sm:$0xff] }
  0x43   :  { %911 = vmatpush1.bf16.msra.mxu0 %v910_v0  ;;  %v320_v41 = vld [vmem:[#allocation6 + $0xb0] sm:$0xff]  ;;  %v325_v44 = vld [vmem:[#allocation6 + $0xd8] sm:$0xff]  ;;  %v322_v51 = vld [vmem:[#allocation6 + $0xc0] sm:$0xff] }
  0x44   :  { %863 = vmatpush1.bf16.msra.mxu1 %v862_v39  ;;  %913 = vmatprep.subr.bf16.mxu0 %v912_v2  ;;  %v924_v39 = vpack.c.bf16 %v321_v32, %v319_v31  ;;  %v92_v45 = vld [vmem:[#allocation3 + $0xd0] sm:$0xff]  ;;  %v101_v47 = vld [vmem:[#allocation3 + $0x118] sm:$0xff]  ;;  %v926_v49 = vpack.c.bf16 %v320_v41, %v318_v40  ;;  %v928_v50 = vpack.c.bf16 %v325_v44, %v323_v43  ;;  %v326_v63 = vld [vmem:[#allocation6 + $0xe0] sm:$0xff] }
  0x45   :  { %865 = vmatprep.subr.bf16.mxu1 %v864_v42  ;;  %v882_v42 = vpack.c.bf16 %v88_v35, %v84_v34  ;;  %v96_v46 = vld [vmem:[#allocation3 + $0xf0] sm:$0xff]  ;;  %v105_v48 = vld [vmem:[#allocation3 + $0x138] sm:$0xff]  ;;  %v331_v3 = vld [vmem:[#allocation6 + $0x108] sm:$0xff] }
  0x46   :  { %v324_v52 = vld [vmem:[#allocation6 + $0xd0] sm:$0xff]  ;;  %v886_v53 = vpack.c.bf16 %v96_v46, %v92_v45  ;;  %v329_v55 = vld [vmem:[#allocation6 + $0xf8] sm:$0xff]  ;;  %v888_v56 = vpack.c.bf16 %v105_v48, %v101_v47  ;;  %v330_v12 = vld [vmem:[#allocation6 + $0x100] sm:$0xff] }
  0x47   :  { %915 = vmatpush1.bf16.msra.mxu0 %v914_v13  ;;  %v100_v57 = vld [vmem:[#allocation3 + $0x110] sm:$0xff]  ;;  %v113_v60 = vld [vmem:[#allocation3 + $0x178] sm:$0xff]  ;;  %v930_v61 = vpack.c.bf16 %v324_v52, %v322_v51  ;;  %v335_v15 = vld [vmem:[#allocation6 + $0x128] sm:$0xff] }
  0x48   :  { %867 = vmatpush1.bf16.msra.mxu1 %v866_v54  ;;  %917 = vmatprep.subr.bf16.mxu0 %v916_v14  ;;  %v327_v54 = vld [vmem:[#allocation6 + $0xe8] sm:$0xff]  ;;  %v104_v58 = vld [vmem:[#allocation3 + $0x130] sm:$0xff]  ;;  %v333_v4 = vld [vmem:[#allocation6 + $0x118] sm:$0xff] }
  0x49   :  { %869 = vmatprep.subr.bf16.mxu1 %v868_v59  ;;  %v109_v59 = vld [vmem:[#allocation3 + $0x158] sm:$0xff]  ;;  %v932_v62 = vpack.c.bf16 %v329_v55, %v327_v54  ;;  %v328_v0 = vld [vmem:[#allocation6 + $0xf0] sm:$0xff]  ;;  %v890_v2 = vpack.c.bf16 %v104_v58, %v100_v57  ;;  %v936_v11 = vpack.c.bf16 %v333_v4, %v331_v3  ;;  %v334_v25 = vld [vmem:[#allocation6 + $0x120] sm:$0xff] }
  0x4a   :  { %v108_v6 = vld [vmem:[#allocation3 + $0x150] sm:$0xff]  ;;  %v121_v9 = vld [vmem:[#allocation3 + $0x1b8] sm:$0xff]  ;;  %v934_v10 = vpack.c.bf16 %v328_v0, %v326_v63  ;;  %v339_v28 = vld [vmem:[#allocation6 + $0x148] sm:$0xff] }
  0x4b   :  { %919 = vmatpush1.bf16.msra.mxu0 %v918_v26  ;;  %v112_v7 = vld [vmem:[#allocation3 + $0x170] sm:$0xff]  ;;  %v337_v16 = vld [vmem:[#allocation6 + $0x138] sm:$0xff]  ;;  %v338_v35 = vld [vmem:[#allocation6 + $0x140] sm:$0xff] }
  0x4c   :  { %871 = vmatpush1.bf16.msra.mxu1 %v870_v5  ;;  %921 = vmatprep.subr.bf16.mxu0 %v920_v27  ;;  %v892_v5 = vpack.c.bf16 %v113_v60, %v109_v59  ;;  %v332_v13 = vld [vmem:[#allocation6 + $0x110] sm:$0xff]  ;;  %v894_v14 = vpack.c.bf16 %v112_v7, %v108_v6  ;;  %v129_v22 = vld [vmem:[#allocation3 + $0x1f8] sm:$0xff]  ;;  %v940_v24 = vpack.c.bf16 %v337_v16, %v335_v15  ;;  %v347_v44 = vld [vmem:[#allocation6 + $0x188] sm:$0xff] }
  0x4d   :  { %873 = vmatprep.subr.bf16.mxu1 %v872_v8  ;;  %v117_v8 = vld [vmem:[#allocation3 + $0x198] sm:$0xff]  ;;  %v116_v19 = vld [vmem:[#allocation3 + $0x190] sm:$0xff]  ;;  %v938_v23 = vpack.c.bf16 %v332_v13, %v330_v12  ;;  %v346_v47 = vld [vmem:[#allocation6 + $0x180] sm:$0xff] }
  0x4e   :  { %v120_v20 = vld [vmem:[#allocation3 + $0x1b0] sm:$0xff]  ;;  %v341_v29 = vld [vmem:[#allocation6 + $0x158] sm:$0xff]  ;;  %v354_v58 = vld [vmem:[#allocation6 + $0x1c0] sm:$0xff] }
  0x4f   :  { %217 = vmatmul.mubr.f32.vlgmr.msra.gmra.mrb[0].mxu1 %v1326_v17  ;;  %923 = vmatpush1.bf16.msra.mxu0 %v922_v38  ;;  %v336_v26 = vld [vmem:[#allocation6 + $0x130] sm:$0xff]  ;;  %v898_v27 = vpack.c.bf16 %v120_v20, %v116_v19  ;;  %v944_v34 = vpack.c.bf16 %v341_v29, %v339_v28  ;;  %v343_v38 = vld [vmem:[#allocation6 + $0x168] sm:$0xff]  ;;  %v353_v51 = vld [vmem:[#allocation6 + $0x1b8] sm:$0xff] }
  0x50   :  { %875 = vmatpush1.bf16.msra.mxu1 %v874_v18  ;;  %287 = vmatprep.mubr.f32.mxu1 %v1230_v1  ;;  %v884_v1 = vpack.c.bf16 %v97_v37, %v93_v36  ;;  %v896_v18 = vpack.c.bf16 %v121_v9, %v117_v8  ;;  %v124_v31 = vld [vmem:[#allocation3 + $0x1d0] sm:$0xff]  ;;  %v357_v57 = vld [vmem:[#allocation6 + $0x1d8] sm:$0xff]  ;;  %v359_v60 = vld [vmem:[#allocation6 + $0x1e8] sm:$0xff] }
  0x51   :  { %877 = vmatprep.subr.bf16.mxu1 %v876_v21  ;;  %925 = vmatprep.subr.bf16.mxu0 %v924_v39  ;;  %v125_v21 = vld [vmem:[#allocation3 + $0x1d8] sm:$0xff]  ;;  %v128_v32 = vld [vmem:[#allocation3 + $0x1f0] sm:$0xff]  ;;  %v358_v0 = vld [vmem:[#allocation6 + $0x1e0] sm:$0xff] }
  0x52   :  { %v340_v36 = vld [vmem:[#allocation6 + $0x150] sm:$0xff]  ;;  %v902_v37 = vpack.c.bf16 %v128_v32, %v124_v31  ;;  %v345_v39 = vld [vmem:[#allocation6 + $0x178] sm:$0xff]  ;;  %v363_v4 = vld [vmem:[#allocation6 + $0x208] sm:$0xff]  ;;  %v132_v32 = vlaneseq }
  0x53   :  { %927 = vmatpush1.bf16.msra.mxu0 %v926_v49  ;;  %v946_v40 = vpack.c.bf16 %v340_v36, %v338_v35  ;;  %v948_v41 = vpack.c.bf16 %v345_v39, %v343_v38  ;;  %v344_v43 = vld [vmem:[#allocation6 + $0x170] sm:$0xff]  ;;  %v600_v7 = vld [vmem:[%s1512_s5 + $0x80] sm:$0xff]  ;;  %v601_v8 = vld [vmem:[%s1512_s5 + $0x88] sm:$0xff] }
  0x54   :  { %879 = vmatpush1.bf16.msra.mxu1 %v878_v30  ;;  %929 = vmatprep.subr.bf16.mxu0 %v928_v50  ;;  %v900_v30 = vpack.c.bf16 %v129_v22, %v125_v21  ;;  %v348_v48 = vld [vmem:[#allocation6 + $0x190] sm:$0xff]  ;;  %v351_v50 = vld [vmem:[#allocation6 + $0x1a8] sm:$0xff]  ;;  %v584_v9 = vld [vmem:[%s1512_s5] sm:$0xff] }
  0x55   :  { %881 = vmatprep.subr.bf16.mxu1 %v880_v33  ;;  %v942_v33 = vpack.c.bf16 %v336_v26, %v334_v25  ;;  %v954_v49 = vpack.c.bf16 %v348_v48, %v346_v47  ;;  %v956_v52 = vpack.c.bf16 %v353_v51, %v351_v50  ;;  %v352_v54 = vld [vmem:[#allocation6 + $0x1b0] sm:$0xff]  ;;  %v604_v19 = vld [vmem:[%s1512_s5 + $0xa0] sm:$0xff]  ;;  %v605_v20 = vld [vmem:[%s1512_s5 + $0xa8] sm:$0xff] }
  0x56   :  { %v356_v59 = vld [vmem:[#allocation6 + $0x1d0] sm:$0xff]  ;;  %v1040_v22 = vpack.c.bf16 %v605_v20, %v604_v19  ;;  %v1385_v35 = vld [vmem:[%s1509_s2] sm:$0xf] }
  0x57   :  { %931 = vmatpush1.bf16.msra.mxu0 %v930_v61  ;;  %v361_v61 = vld [vmem:[#allocation6 + $0x1f8] sm:$0xff]  ;;  %v602_v12 = vld [vmem:[%s1512_s5 + $0x90] sm:$0xff] }
  0x58   :  { %883 = vmatpush1.bf16.msra.mxu1 %v882_v42  ;;  %933 = vmatprep.subr.bf16.mxu0 %v932_v62  ;;  %v342_v42 = vld [vmem:[#allocation6 + $0x160] sm:$0xff]  ;;  %v962_v62 = vpack.c.bf16 %v356_v59, %v354_v58  ;;  %v964_v63 = vpack.c.bf16 %v361_v61, %v359_v60  ;;  %v603_v13 = vld [vmem:[%s1512_s5 + $0x98] sm:$0xff]  ;;  %v586_v16 = vld [vmem:[%s1512_s5 + $0x10] sm:$0xff] }
  0x59   :  { %885 = vmatprep.subr.bf16.mxu1 %v884_v1  ;;  %v349_v1 = vld [vmem:[#allocation6 + $0x198] sm:$0xff]  ;;  %v950_v45 = vpack.c.bf16 %v344_v43, %v342_v42  ;;  %v1036_v15 = vpack.c.bf16 %v603_v13, %v602_v12  ;;  %v606_v25 = vld [vmem:[%s1512_s5 + $0xb0] sm:$0xff]  ;;  %v362_v43 = vld [vmem:[#allocation6 + $0x200] sm:$0xff] }
  0x5a   :  { %v952_v46 = vpack.c.bf16 %v349_v1, %v347_v44  ;;  %v607_v26 = vld [vmem:[%s1512_s5 + $0xb8] sm:$0xff]  ;;  %v590_v29 = vld [vmem:[%s1512_s5 + $0x30] sm:$0xff]  ;;  %v374_v61 = vld [vmem:[#allocation6 + $0x260] sm:$0xff] }
  0x5b   :  { %935 = vmatpush1.bf16.msra.mxu0 %v934_v10  ;;  %v1032_v10 = vpack.c.bf16 %v601_v8, %v600_v7  ;;  %v1044_v28 = vpack.c.bf16 %v607_v26, %v606_v25  ;;  %v364_v44 = vld [vmem:[#allocation6 + $0x210] sm:$0xff]  ;;  %v367_v1 = vld [vmem:[#allocation6 + $0x228] sm:$0xff]  ;;  %v385_v8 = vld [vmem:[#allocation6 + $0x2b8] sm:$0xff] }
  0x5c   :  { %887 = vmatpush1.bf16.msra.mxu1 %v886_v53  ;;  %937 = vmatprep.subr.bf16.mxu0 %v936_v11  ;;  %v350_v53 = vld [vmem:[#allocation6 + $0x1a0] sm:$0xff]  ;;  %v368_v50 = vld [vmem:[#allocation6 + $0x230] sm:$0xff]  ;;  %v375_v58 = vld [vmem:[#allocation6 + $0x268] sm:$0xff] }
  0x5d   :  { %889 = vmatprep.subr.bf16.mxu1 %v888_v56  ;;  %v958_v55 = vpack.c.bf16 %v352_v54, %v350_v53  ;;  %v355_v56 = vld [vmem:[#allocation6 + $0x1c8] sm:$0xff]  ;;  %v373_v53 = vld [vmem:[#allocation6 + $0x258] sm:$0xff]  ;;  %v384_v12 = vld [vmem:[#allocation6 + $0x2b0] sm:$0xff] }
  0x5e   :  { %v585_v11 = vld [vmem:[%s1512_s5 + $0x8] sm:$0xff]  ;;  %v393_v25 = vld [vmem:[#allocation6 + $0x2f8] sm:$0xff] }
  0x5f   :  { %939 = vmatpush1.bf16.msra.mxu0 %v938_v23  ;;  %v588_v23 = vld [vmem:[%s1512_s5 + $0x20] sm:$0xff]  ;;  %v383_v7 = vld [vmem:[#allocation6 + $0x2a8] sm:$0xff] }
  0x60   :  { %891 = vmatpush1.bf16.msra.mxu1 %v890_v2  ;;  %941 = vmatprep.subr.bf16.mxu0 %v940_v24  ;;  %v360_v2 = vld [vmem:[#allocation6 + $0x1f0] sm:$0xff]  ;;  %v589_v24 = vld [vmem:[%s1512_s5 + $0x28] sm:$0xff] }
  0x61   :  { %893 = vmatprep.subr.bf16.mxu1 %v892_v5  ;;  %v966_v3 = vpack.c.bf16 %v360_v2, %v358_v0  ;;  %v365_v5 = vld [vmem:[#allocation6 + $0x218] sm:$0xff] }
  0x62   :  { %v968_v6 = vpack.c.bf16 %v365_v5, %v363_v4  ;;  %v381_v0 = vld [vmem:[#allocation6 + $0x298] sm:$0xff]  ;;  %v378_v4 = vld [vmem:[#allocation6 + $0x280] sm:$0xff]  ;;  %v380_v5 = vld [vmem:[#allocation6 + $0x290] sm:$0xff] }
  0x63   :  { %943 = vmatpush1.bf16.msra.mxu0 %v942_v33  ;;  %v1379_v33 = vshrl.u32 %v132_v32, 7 }
  0x64   :  { %895 = vmatpush1.bf16.msra.mxu1 %v894_v14  ;;  %945 = vmatprep.subr.bf16.mxu0 %v944_v34  ;;  %v1034_v14 = vpack.c.bf16 %v585_v11, %v584_v9  ;;  %v986_v9 = vpack.c.bf16 %v380_v5, %v378_v4  ;;  %v382_v11 = vld [vmem:[#allocation6 + $0x2a0] sm:$0xff] }
  0x65   :  { %897 = vmatprep.subr.bf16.mxu1 %v896_v18  ;;  %v587_v18 = vld [vmem:[%s1512_s5 + $0x18] sm:$0xff]  ;;  %v134_v34 = vsub.s32 0, %v1379_v33  ;;  %v138_v36 = vsub.s32 1, %v1379_v33 }
  0x66   :  { %v1038_v21 = vpack.c.bf16 %v587_v18, %v586_v16  ;;  %v990_v18 = vpack.c.bf16 %v384_v12, %v382_v11 }
  0x67   :  { %947 = vmatpush1.bf16.msra.mxu0 %v946_v40  ;;  %v139_v38 = vrot.slane %v1385_v35, %v138_v36 }
  0x68   :  { %899 = vmatpush1.bf16.msra.mxu1 %v898_v27  ;;  %949 = vmatprep.subr.bf16.mxu0 %v948_v41  ;;  %v1042_v27 = vpack.c.bf16 %v589_v24, %v588_v23  ;;  %v391_v24 = vld [vmem:[#allocation6 + $0x2e8] sm:$0xff] }
  0x69   :  { %901 = vmatprep.subr.bf16.mxu1 %v900_v30  ;;  %v591_v30 = vld [vmem:[%s1512_s5 + $0x38] sm:$0xff] }
  0x6a   :  { %v1046_v31 = vpack.c.bf16 %v591_v30, %v590_v29  ;;  %v392_v29 = vld [vmem:[#allocation6 + $0x2f0] sm:$0xff]  ;;  %v395_v30 = vld [vmem:[#allocation6 + $0x308] sm:$0xff] }
  0x6b   :  { %951 = vmatpush1.bf16.msra.mxu0 %v950_v45  ;;  %v369_v45 = vld [vmem:[#allocation6 + $0x238] sm:$0xff] }
  0x6c   :  { %903 = vmatpush1.bf16.msra.mxu1 %v902_v37  ;;  %953 = vmatprep.subr.bf16.mxu0 %v952_v46  ;;  %v135_v37 = vrot.slane %v1385_v35, %v134_v34  ;;  %v970_v46 = vpack.c.bf16 %v364_v44, %v362_v43  ;;  %v972_v48 = vpack.c.bf16 %v369_v45, %v367_v1  ;;  %v398_v1 = vld [vmem:[#allocation6 + $0x320] sm:$0xff]  ;;  %v400_v45 = vld [vmem:[#allocation6 + $0x330] sm:$0xff] }
  0x6d   :  { %1033 = vmatprep.subr.bf16.mxu1 %v1032_v10  ;;  %v988_v10 = vpack.c.bf16 %v385_v8, %v383_v7  ;;  %v416_v7 = vld [vmem:[#allocation6 + $0x3b0] sm:$0xff]  ;;  %v419_v8 = vld [vmem:[#allocation6 + $0x3c8] sm:$0xff] }
  0x6f   :  { %288 = vmatmul.mubr.f32.vlgmr.msra.gmra.mrb[2].mxu1 %v1326_v17  ;;  %955 = vmatpush1.bf16.msra.mxu0 %v954_v49  ;;  %v960_v17 = vpack.c.bf16 %v357_v57, %v355_v56  ;;  %v366_v49 = vld [vmem:[#allocation6 + $0x220] sm:$0xff]  ;;  %v372_v57 = vld [vmem:[#allocation6 + $0x250] sm:$0xff] }
  0x70   :  { %957 = vmatprep.subr.bf16.mxu0 %v956_v52  ;;  %1035 = vmatpush3.bf16.msra.mxu1 %v1034_v14  ;;  %v371_v52 = vld [vmem:[#allocation6 + $0x248] sm:$0xff]  ;;  %v974_v54 = vpack.c.bf16 %v368_v50, %v366_v49  ;;  %v370_v56 = vld [vmem:[#allocation6 + $0x240] sm:$0xff] }
  0x71   :  { %1037 = vmatprep.subr.bf16.mxu1 %v1036_v15  ;;  %v978_v59 = vpack.c.bf16 %v372_v57, %v370_v56  ;;  %v387_v14 = vld [vmem:[#allocation6 + $0x2c8] sm:$0xff]  ;;  %v389_v15 = vld [vmem:[#allocation6 + $0x2d8] sm:$0xff]  ;;  %v402_v50 = vld [vmem:[#allocation6 + $0x340] sm:$0xff] }
  0x72   :  { %v992_v20 = vpack.c.bf16 %v389_v15, %v387_v14  ;;  %v406_v56 = vld [vmem:[#allocation6 + $0x360] sm:$0xff]  ;;  %v408_v57 = vld [vmem:[#allocation6 + $0x370] sm:$0xff]  ;;  %v423_v15 = vld [vmem:[#allocation6 + $0x3e8] sm:$0xff] }
  0x73   :  { %959 = vmatpush1.bf16.msra.mxu0 %v958_v55  ;;  %v976_v55 = vpack.c.bf16 %v373_v53, %v371_v52  ;;  %v407_v52 = vld [vmem:[#allocation6 + $0x368] sm:$0xff]  ;;  %v409_v53 = vld [vmem:[#allocation6 + $0x378] sm:$0xff]  ;;  %v420_v14 = vld [vmem:[#allocation6 + $0x3d0] sm:$0xff] }
  0x74   :  { %961 = vmatprep.subr.bf16.mxu0 %v960_v17  ;;  %1039 = vmatpush3.bf16.msra.mxu1 %v1038_v21  ;;  %v377_v17 = vld [vmem:[#allocation6 + $0x278] sm:$0xff]  ;;  %v386_v21 = vld [vmem:[#allocation6 + $0x2c0] sm:$0xff] }
  0x75   :  { %1041 = vmatprep.subr.bf16.mxu1 %v1040_v22  ;;  %v980_v60 = vpack.c.bf16 %v377_v17, %v375_v58  ;;  %v388_v22 = vld [vmem:[#allocation6 + $0x2d0] sm:$0xff]  ;;  %v411_v58 = vld [vmem:[#allocation6 + $0x388] sm:$0xff]  ;;  %v413_v17 = vld [vmem:[#allocation6 + $0x398] sm:$0xff] }
  0x76   :  { %v994_v26 = vpack.c.bf16 %v388_v22, %v386_v21  ;;  %v424_v21 = vld [vmem:[#allocation6 + $0x3f0] sm:$0xff] }
  0x77   :  { %963 = vmatpush1.bf16.msra.mxu0 %v962_v62  ;;  %v376_v62 = vld [vmem:[#allocation6 + $0x270] sm:$0xff] }
  0x78   :  { %965 = vmatprep.subr.bf16.mxu0 %v964_v63  ;;  %1043 = vmatpush3.bf16.msra.mxu1 %v1042_v27  ;;  %v379_v63 = vld [vmem:[#allocation6 + $0x288] sm:$0xff]  ;;  %v982_v2 = vpack.c.bf16 %v376_v62, %v374_v61  ;;  %v996_v27 = vpack.c.bf16 %v393_v25, %v391_v24  ;;  %v1016_v61 = vpack.c.bf16 %v413_v17, %v411_v58  ;;  %v410_v62 = vld [vmem:[#allocation6 + $0x380] sm:$0xff] }
  0x79   :  { %1045 = vmatprep.subr.bf16.mxu1 %v1044_v28  ;;  %v390_v28 = vld [vmem:[#allocation6 + $0x2e0] sm:$0xff] }
  0x7a   :  { %v998_v32 = vpack.c.bf16 %v392_v29, %v390_v28  ;;  %v609_v24 = vld [vmem:[%s1512_s5 + $0xc8] sm:$0xff]  ;;  %v610_v29 = vld [vmem:[%s1512_s5 + $0xd0] sm:$0xff] }
  0x7b   :  { %967 = vmatpush1.bf16.msra.mxu0 %v966_v3  ;;  %v984_v3 = vpack.c.bf16 %v381_v0, %v379_v63  ;;  %v412_v63 = vld [vmem:[#allocation6 + $0x390] sm:$0xff]  ;;  %v415_v0 = vld [vmem:[#allocation6 + $0x3a8] sm:$0xff] }
  0x7c   :  { %969 = vmatprep.subr.bf16.mxu0 %v968_v6  ;;  %1047 = vmatpush3.bf16.msra.mxu1 %v1046_v31  ;;  %v146_v6 = vsub.s32 3, %v1379_v33  ;;  %v397_v31 = vld [vmem:[#allocation6 + $0x318] sm:$0xff]  ;;  %v1018_v4 = vpack.c.bf16 %v412_v63, %v410_v62 }
  0x7e   :  { %v147_v13 = vrot.slane %v1385_v35, %v146_v6  ;;  %v414_v6 = vld [vmem:[#allocation6 + $0x3a0] sm:$0xff] }
  0x7f   :  { %v1022_v11 = vpack.c.bf16 %v416_v7, %v414_v6 }
 0x122   :  { %v218_v39 = vpop.f32.mrb[0].mxu1 }
 0x123   :  { %v219_v40 = vadd.f32 %v218_v39, %v135_v37  ;;  %v220_v41 = vpop.f32.mrb[1].mxu1  ;;  %v1000_v37 = vpack.c.bf16 %v397_v31, %v395_v30  ;;  %v396_v39 = vld [vmem:[#allocation6 + $0x310] sm:$0xff] }
 0x124   :  { %v221_v42 = vadd.f32 %v220_v41, %v139_v38  ;;  %v394_v38 = vld [vmem:[#allocation6 + $0x300] sm:$0xff]  ;;  %v401_v41 = vld [vmem:[#allocation6 + $0x338] sm:$0xff] }
 0x125   :  { %v611_v30 = vld [vmem:[%s1512_s5 + $0xd8] sm:$0xff] }
 0x126   :  { %1080 = vtanh.f32 %v221_v42  ;;  %v1002_v42 = vpack.c.bf16 %v396_v39, %v394_v38  ;;  %v1052_v31 = vpack.c.bf16 %v611_v30, %v610_v29  ;;  %v612_v39 = vld [vmem:[%s1512_s5 + $0xe0] sm:$0xff] }
 0x127   :  { %1082 = vtanh.f32 %v219_v40  ;;  %v399_v40 = vld [vmem:[#allocation6 + $0x328] sm:$0xff] }
 0x128   :  { %v1004_v44 = vpack.c.bf16 %v401_v41, %v399_v40  ;;  %v613_v40 = vld [vmem:[%s1512_s5 + $0xe8] sm:$0xff] }
 0x129   :  { %v1056_v41 = vpack.c.bf16 %v613_v40, %v612_v39 }
 0x130   :  { %v1081_v47 = vpop.eup %1080 }
 0x131   :  { %v1083_v51 = vpop.eup %1082  ;;  %502 = vmatprep.mubr.f32.mxu0 %v1081_v47  ;;  %v405_v47 = vld [vmem:[#allocation6 + $0x358] sm:$0xff] }
 0x132   :  { %503 = vmatmul.mubr.f32.vlgmr.msra.gmra.mrb[0].mxu0 %v1083_v51  ;;  %v404_v51 = vld [vmem:[#allocation6 + $0x350] sm:$0xff] }
 0x133   :  { %971 = vmatpush1.bf16.msra.mxu0 %v970_v46  ;;  %v403_v46 = vld [vmem:[#allocation6 + $0x348] sm:$0xff] }
 0x134   :  { %973 = vmatprep.subr.bf16.mxu0 %v972_v48  ;;  %v1006_v48 = vpack.c.bf16 %v400_v45, %v398_v1  ;;  %v1008_v49 = vpack.c.bf16 %v405_v47, %v403_v46  ;;  %v614_v1 = vld [vmem:[%s1512_s5 + $0xf0] sm:$0xff]  ;;  %v615_v45 = vld [vmem:[%s1512_s5 + $0xf8] sm:$0xff] }
 0x135   :  { %v1060_v46 = vpack.c.bf16 %v615_v45, %v614_v1  ;;  %v598_v47 = vld [vmem:[%s1512_s5 + $0x70] sm:$0xff] }
 0x137   :  { %975 = vmatpush1.bf16.msra.mxu0 %v974_v54  ;;  %v1010_v54 = vpack.c.bf16 %v404_v51, %v402_v50  ;;  %v804_v50 = vld [vmem:[#allocation2] ss:$0 sm:$0xff]  ;;  %v1231_v51 = vmov 0  }
 0x138   :  { %977 = vmatprep.subr.bf16.mxu0 %v976_v55  ;;  %v1012_v55 = vpack.c.bf16 %v409_v53, %v407_v52  ;;  %1079 = vset.pattern.permute.xlu0 %v1231_v51  ;;  %v426_v52 = vld [vmem:[%s1511_s4] sm:$0x3] }
 0x139   :  { %623 = vperm.xlu0 %1079, %v804_v50   ;;  %v431_v53 = vrot.slane %v426_v52, %v134_v34 }
 0x13b   :  { %979 = vmatpush1.bf16.msra.mxu0 %v978_v59  ;;  %v1014_v59 = vpack.c.bf16 %v408_v57, %v406_v56 }
 0x13c   :  { %981 = vmatprep.subr.bf16.mxu0 %v980_v60  ;;  %v142_v60 = vsub.s32 2, %v1379_v33 }
 0x13f   :  { %983 = vmatpush1.bf16.msra.mxu0 %v982_v2  ;;  %v417_v2 = vld [vmem:[#allocation6 + $0x3b8] sm:$0xff] }
 0x140   :  { %985 = vmatprep.subr.bf16.mxu0 %v984_v3  ;;  %v143_v3 = vrot.slane %v1385_v35, %v142_v60  ;;  %v1020_v5 = vpack.c.bf16 %v417_v2, %v415_v0 }
 0x142   :  { %v1396_v16 = vpop.f32.mrb[2].mxu1 }
 0x143   :  { %987 = vmatpush1.bf16.msra.mxu0 %v986_v9  ;;  %v291_v19 = vpop.f32.mrb[3].mxu1  ;;  %v421_v9 = vld [vmem:[#allocation6 + $0x3d8] sm:$0xff] }
 0x144   :  { %989 = vmatprep.subr.bf16.mxu0 %v988_v10  ;;  %v292_v23 = vadd.f32 %v291_v19, %v147_v13  ;;  %v290_v10 = vadd.f32 %v1396_v16, %v143_v3  ;;  %v1024_v12 = vpack.c.bf16 %v421_v9, %v419_v8  ;;  %v418_v13 = vld [vmem:[#allocation6 + $0x3c0] sm:$0xff] }
 0x145   :  { %v1026_v35 = vpack.c.bf16 %v420_v14, %v418_v13 }
 0x146   :  { %1084 = vtanh.f32 %v292_v23  ;;  %v608_v23 = vld [vmem:[%s1512_s5 + $0xc0] sm:$0xff] }
 0x147   :  { %991 = vmatpush1.bf16.msra.mxu0 %v990_v18  ;;  %v425_v18 = vld [vmem:[#allocation6 + $0x3f8] sm:$0xff]  ;;  %1086 = vtanh.f32 %v290_v10  ;;  %v1048_v25 = vpack.c.bf16 %v609_v24, %v608_v23 }
 0x148   :  { %993 = vmatprep.subr.bf16.mxu0 %v992_v20  ;;  %v1028_v19 = vpack.c.bf16 %v425_v18, %v423_v15  ;;  %v422_v20 = vld [vmem:[#allocation6 + $0x3e0] sm:$0xff] }
 0x149   :  { %v1030_v22 = vpack.c.bf16 %v424_v21, %v422_v20  ;;  %1049 = vmatprep.subr.bf16.mxu1 %v1048_v25 }
 0x14b   :  { %995 = vmatpush1.bf16.msra.mxu0 %v994_v26  ;;  %v592_v26 = vld [vmem:[%s1512_s5 + $0x40] sm:$0xff] }
 0x14c   :  { %997 = vmatprep.subr.bf16.mxu0 %v996_v27  ;;  %v593_v27 = vld [vmem:[%s1512_s5 + $0x48] sm:$0xff] }
 0x14d   :  { %v1050_v28 = vpack.c.bf16 %v593_v27, %v592_v26 }
 0x14f   :  { %999 = vmatpush1.bf16.msra.mxu0 %v998_v32  ;;  %1051 = vmatpush3.bf16.msra.mxu1 %v1050_v28  ;;  %v594_v32 = vld [vmem:[%s1512_s5 + $0x50] sm:$0xff] }
 0x150   :  { %v1085_v43 = vpop.eup %1084  ;;  %1001 = vmatprep.subr.bf16.mxu0 %v1000_v37  ;;  %v595_v37 = vld [vmem:[%s1512_s5 + $0x58] sm:$0xff]  ;;  %1053 = vmatprep.subr.bf16.mxu1 %v1052_v31 }
 0x151   :  { %573 = vmatprep.mubr.f32.mxu0 %v1085_v43  ;;  %v1087_v16 = vpop.eup %1086  ;;  %v1054_v38 = vpack.c.bf16 %v595_v37, %v594_v32  ;;  %v597_v43 = vld [vmem:[%s1512_s5 + $0x68] sm:$0xff] }
 0x153   :  { %1003 = vmatpush1.bf16.msra.mxu0 %v1002_v42  ;;  %1055 = vmatpush3.bf16.msra.mxu1 %v1054_v38  ;;  %v596_v42 = vld [vmem:[%s1512_s5 + $0x60] sm:$0xff] }
 0x154   :  { %1005 = vmatprep.subr.bf16.mxu0 %v1004_v44  ;;  %v1058_v44 = vpack.c.bf16 %v597_v43, %v596_v42  ;;  %1057 = vmatprep.subr.bf16.mxu1 %v1056_v41 }
 0x157   :  { %1007 = vmatpush1.bf16.msra.mxu0 %v1006_v48  ;;  %1059 = vmatpush3.bf16.msra.mxu1 %v1058_v44  ;;  %v599_v48 = vld [vmem:[%s1512_s5 + $0x78] sm:$0xff] }
 0x158   :  { %1009 = vmatprep.subr.bf16.mxu0 %v1008_v49  ;;  %v1062_v49 = vpack.c.bf16 %v599_v48, %v598_v47  ;;  %1061 = vmatprep.subr.bf16.mxu1 %v1060_v46  ;;  %v750_v47 = vld [vmem:[%s1514_s7] sm:$0xff] }
 0x15b   :  { %1011 = vmatpush1.bf16.msra.mxu0 %v1010_v54  ;;  %1063 = vmatpush3.bf16.msra.mxu1 %v1062_v49  ;;  %v435_v54 = vrot.slane %v426_v52, %v138_v36 }
 0x15c   :  { %1013 = vmatprep.subr.bf16.mxu0 %v1012_v55 }
 0x15f   :  { %1015 = vmatpush1.bf16.msra.mxu0 %v1014_v59 }
 0x160   :  { %1017 = vmatprep.subr.bf16.mxu0 %v1016_v61 }
 0x163   :  { %1019 = vmatpush1.bf16.msra.mxu0 %v1018_v4 }
 0x164   :  { %1021 = vmatprep.subr.bf16.mxu0 %v1020_v5 }
 0x167   :  { %1023 = vmatpush1.bf16.msra.mxu0 %v1022_v11 }
 0x168   :  { %1025 = vmatprep.subr.bf16.mxu0 %v1024_v12 }
 0x16b   :  { %1027 = vmatpush1.bf16.msra.mxu0 %v1026_v35 }
 0x16c   :  { %1029 = vmatprep.subr.bf16.mxu0 %v1028_v19 }
 0x16f   :  { %1031 = vmatpush1.bf16.msra.mxu0 %v1030_v22 }
 0x172   :  { %574 = vmatmul.mubr.f32.vlgmr.msra.gmra.mrb[0].mxu0 %v1087_v16 }
 0x1b8   :  { %v624_v62 = vpop.permute.xlu0 %623 }
 0x245   :  { %v575_v55 = vpop.f32.mrb[0].mxu0 }
 0x246   :  { %v1064_v56 = vadd.f32 %v575_v55, %v431_v53  ;;  %v577_v57 = vpop.f32.mrb[1].mxu0 }
 0x247   :  { %v1065_v58 = vadd.f32 %v577_v57, %v435_v54 }
 0x248   :  { %1088 = vtanh.f32 %v1064_v56 }
 0x249   :  { %1090 = vtanh.f32 %v1065_v58 }
 0x252   :  { %v1089_v17 = vpop.eup %1088 }
 0x253   :  { %v1091_v59 = vpop.eup %1090  ;;  %582 = vst [vmem:[#allocation11] sm:$0xff] %v1089_v17 }
 0x254   :  { %583 = vst [vmem:[#allocation11 + $0x8] sm:$0xff] %v1091_v59  ;;  %690 = vmatprep.mubr.f32.mxu1 %v1091_v59 }
 0x255   :  { %691 = vmatmul.mubr.f32.vlgmr.msra.gmra.mrb[4].mxu1 %v1089_v17 }
 0x328   :  { %v837_v60 = vpop.f32.mrb[4].mxu1 }
 0x329   :  { %v838_v61 = vpop.f32.mrb[5].mxu1 }
 0x32a   :  { %v839_v63 = vadd.f32 %v838_v61, %v837_v60 }
 0x32c   :  { %v693_v34 = vadd.f32 %v839_v63, %v624_v62 }
 0x32e   :  { %v697_v33 = vsel %vm696_vm0, %v693_v34, 0.0 }
 0x32f   :  { %v698_v36 = vrot.slane %v697_v33, 4 }
 0x331   :  { %v699_v0 = vadd.f32 %v698_v36, %v697_v33 }
 0x333   :  { %v700_v2 = vrot.slane %v699_v0, 2 }
 0x335   :  { %v701_v3 = vadd.f32 %v700_v2, %v699_v0 }
 0x337   :  { %v702_v4 = vrot.slane %v701_v3, 1 }
 0x339   :  { %v703_v5 = vadd.f32 %v702_v4, %v701_v3 }
 0x33b   :  { %v705_v6 = vmul.f32 0.125, %v703_v5 }
 0x33d   :  { %v706_v7 = vsub.f32 %v693_v34, %v705_v6 }
 0x33f   :  { %v707_v8 = vmul.f32 %v706_v7, %v706_v7 }
 0x341   :  { %v708_v9 = vsel %vm696_vm0, %v707_v8, 0.0 }
 0x342   :  { %v709_v10 = vrot.slane %v708_v9, 4 }
 0x344   :  { %v710_v11 = vadd.f32 %v709_v10, %v708_v9 }
 0x346   :  { %v711_v12 = vrot.slane %v710_v11, 2 }
 0x348   :  { %v712_v13 = vadd.f32 %v711_v12, %v710_v11 }
 0x34a   :  { %v713_v14 = vrot.slane %v712_v13, 1 }
 0x34c   :  { %v714_v15 = vadd.f32 %v713_v14, %v712_v13 }
 0x34e   :  { %v715_v18 = vmul.f32 0.125, %v714_v15 }
 0x350   :  { %v716_v35 = vadd.f32 1e-05, %v715_v18 }
 0x352   :  { %1092 = vrsqrt.f32 %v716_v35 }
 0x35c   :  { %v1093_v19 = vpop.eup %1092 }
 0x35d   :  { %v718_v20 = vmul.f32 %v1093_v19, %v706_v7 }
 0x35f   :  { %v720_v21 = vmul.f32 -8.0, %v718_v20  ;;  %719 = vst.msk [vmem:[#allocation9] sm:$0xff] %vm696_vm0, %v718_v20 }
 0x361   :  { %v721_v22 = vmul.f32 1.442695, %v720_v21 }
 0x363   :  { %1094 = vpow2.f32 %v721_v22 }
 0x36d   :  { %v1095_v16 = vpop.eup %1094 }
 0x36e   :  { %v723_v23 = vmul.f32 -50.0, %v1095_v16  ;;  %1096 = vrcp.f32 %v1095_v16 }
 0x370   :  { %v726_v24 = vsel %vm696_vm0, %v723_v23, -inf }
 0x371   :  { %727 = vmax.xlane.f32.xlu0 %v726_v24 }
 0x378   :  { %v1097_v25 = vpop.eup %1096 }
 0x379   :  { %v725_v26 = vmul.f32 -50.0, %v1097_v25 }
 0x37b   :  { %v737_v27 = vsel %vm696_vm0, %v725_v26, -inf }
 0x37c   :  { %738 = vmax.xlane.f32.xlu1 %v737_v27 }
 0x3fe   :  { %v728_v28 = vpop.xlane.xlu0 %727 }
 0x3ff   :  { %v729_v29 = vsub.f32 %v723_v23, %v728_v28 }
 0x401   :  { %v730_v30 = vmul.f32 1.442695, %v729_v29 }
 0x403   :  { %1098 = vpow2.f32 %v730_v30 }
 0x409   :  { %v739_v31 = vpop.xlane.xlu1 %738 }
 0x40a   :  { %v740_v32 = vsub.f32 %v725_v26, %v739_v31 }
 0x40c   :  { %v741_v37 = vmul.f32 1.442695, %v740_v32 }
 0x40d   :  { %v1099_v38 = vpop.eup %1098 }
 0x40e   :  { %1100 = vpow2.f32 %v741_v37  ;;  %v732_v39 = vsel %vm696_vm0, %v1099_v38, 0.0 }
 0x40f   :  { %733 = vadd.xlane.f32.xlu1 %v732_v39 }
 0x418   :  { %v1101_v40 = vpop.eup %1100 }
 0x419   :  { %v743_v41 = vsel %vm696_vm0, %v1101_v40, 0.0 }
 0x41a   :  { %744 = vadd.xlane.f32.xlu1 %v743_v41 }
 0x49c   :  { %v734_v42 = vpop.xlane.xlu1 %733 }
 0x49d   :  { %1102 = vrcp.f32 %v734_v42 }
 0x4a7   :  { %v745_v43 = vpop.xlane.xlu1 %744  ;;  %v1103_v44 = vpop.eup %1102 }
 0x4a8   :  { %1104 = vrcp.f32 %v745_v43  ;;  %v736_v45 = vmul.f32 %v1103_v44, %v1099_v38 }
 0x4b2   :  { %v1105_v1 = vpop.eup %1104 }
 0x4b3   :  { %v747_v46 = vmul.f32 %v1105_v1, %v1101_v40 }
 0x4b5   :  { %v748_v48 = vsub.f32 %v736_v45, %v747_v46 }
 0x4b7   :  { %v751_v49 = vmul.f32 %v750_v47, %v748_v48  ;;  %749 = vst.msk [vmem:[#allocation8] sm:$0xff] %vm696_vm0, %v748_v48 }
 0x4b9   :  { %v752_v50 = vsel %vm696_vm0, %v751_v49, 0.0 }
 0x4ba   :  { %753 = vadd.xlane.f32.xlu1 %v752_v50 }
 0x4bb   :  { %1161 = shalt.err (!%p1158_p6)
}
 0x4bc   :  { %s1162_s28 = scalar_lea.hbm %s1517_s10, 128 }
 0x4bd   :  { %p1163_p7 = scmp.ne.s32.totalorder %s1517_s10, %s1162_s28  ;;  %p1166_p8 = scmp.lt.u32.totalorder %s1162_s28, %s1517_s10 }
 0x4bf   :  { %p1168_p9 = pnand %p1166_p8, %p1163_p7 }
 0x4c1   :  { %1171 = shalt.err (!%p1168_p9)
}
 0x4c2   :  { %778 = dma.vmem_to_hbm [thread:$0]  %s776_s3, 128, %s1517_s10, [#allocation10]  }
 0x4c3   :  { %s1172_s16 = scalar_lea.vmem %s766_s0, 128  ;;  %p1177_p11 = scmp.lt.s32.totalorder %s766_s0, %s766_s0 }
 0x4c4   :  { %p1173_p10 = scmp.ne.s32.totalorder %s766_s0, %s1172_s16  ;;  %p1178_p12 = scmp.lt.s32.totalorder %s1172_s16, %s1172_s16 }
 0x4c6   :  { %p1179_p13 = por %p1178_p12, %p1177_p11 }
 0x4c8   :  { %p1180_p0 = pnand %p1179_p13, %p1173_p10 }
 0x4ca   :  { %1183 = shalt.err (!%p1180_p0)
}
 0x4cb   :  { %s1184_s18 = scalar_lea.hbm %s1516_s9, 128 }
 0x4cc   :  { %p1185_p1 = scmp.ne.s32.totalorder %s1516_s9, %s1184_s18  ;;  %p1188_p2 = scmp.lt.u32.totalorder %s1184_s18, %s1516_s9 }
 0x4ce   :  { %p1190_p3 = pnand %p1188_p2, %p1185_p1 }
 0x4d0   :  { %1193 = shalt.err (!%p1190_p3)
}
 0x4d1   :  { %768 = dma.vmem_to_hbm [thread:$0]  %s766_s0, 128, %s1516_s9, [#allocation5]  }
 0x4d2   :  { %s1234_s20 = smov [#allocation11]  }
 0x4d3   :  { %s785_s24 = sshll.u32 %s1234_s20, 4  ;;  %s786_s24 = int_to_ptr.vmem [resolvable:$true] %s785_s24 }
 0x4d4   :  { %s1194_s4 = scalar_lea.vmem %s786_s24, 256  ;;  %p1199_p5 = scmp.lt.s32.totalorder %s786_s24, %s786_s24 }
 0x4d5   :  { %p1195_p4 = scmp.ne.s32.totalorder %s786_s24, %s1194_s4  ;;  %p1200_p6 = scmp.lt.s32.totalorder %s1194_s4, %s1194_s4 }
 0x4d7   :  { %p1201_p7 = por %p1200_p6, %p1199_p5 }
 0x4d9   :  { %p1202_p8 = pnand %p1201_p7, %p1195_p4 }
 0x4db   :  { %1205 = shalt.err (!%p1202_p8)
}
 0x4dc   :  { %s1206_s3 = scalar_lea.hbm %s1518_s11, 256 }
 0x4dd   :  { %p1207_p9 = scmp.ne.s32.totalorder %s1518_s11, %s1206_s3  ;;  %p1210_p10 = scmp.lt.u32.totalorder %s1206_s3, %s1518_s11 }
 0x4df   :  { %p1212_p11 = pnand %p1210_p10, %p1207_p9 }
 0x4e1   :  { %1215 = shalt.err (!%p1212_p11)
}
 0x4e2   :  { %788 = dma.vmem_to_hbm [thread:$0]  %s786_s24, 256, %s1518_s11, [#allocation10]   ;;  %vm755_vm1 = vcmask 7168  }
 0x547   :  { %v754_v51 = vpop.xlane.xlu1 %753 }
 0x548   :  { %756 = vst.msk [vmem:[%s1515_s8] sm:$0xff] %vm755_vm1, %v754_v51 }
 0x549   :  { %1220 = dma.done.wait [#allocation5], 128  }
 0x54a   :  { %1221 = vsyncadd [#allocation5], 4294967168 }
 0x54b   :  { %1222 = dma.done.wait [#allocation10], 384  }
 0x54c   :  { %1223 = vsyncadd [#allocation10], 4294966912 }
 0x54d   :  { %800 = vsyncpa [#allocation4], 1 }
 0x54e   :  { %801 = vsyncpa [#allocation7], 1 }
 0x54f   :  { %802 = vsyncpa [#allocation5], 1 }
 0x550   :  { %803 = vsyncpa [#allocation10], 1 }

</bundles_post_ra>
